<compile_context>
chip_gen: v7x
topology: tpu7x:2x2x1
jax: 0.10.0
libtpu: 0.0.40
codegen_flags: <defaults>
</compile_context>

<pallas_src>
import math
import functools

import numpy as np
import jax
import jax.numpy as jnp
from jax import lax
from jax.experimental import pallas as pl
from jax.experimental.pallas import tpu as pltpu


# -----------------------------------------------------------------------------
# Pallas kernel
# -----------------------------------------------------------------------------
def _make_kernel(n_heads: int, head_dim: int, dim: int, ffn_dim: int, eps: float):
    bf16 = jnp.bfloat16
    half = head_dim // 2

    def kernel(x_ref, cs_ref, wan_ref, wfn_ref,
               wqkv_ref, wo_ref, w13_ref, w2_ref, o_ref):
        x = x_ref[0]                                        # (S, D) f32
        seq = x.shape[0]

        # ---- attention RMSNorm (f32 VPU/EUP) ----
        ms = jnp.mean(x * x, axis=-1, keepdims=True)
        xn = x * lax.rsqrt(ms + eps) * wan_ref[...]         # (S, D)

        # ---- fused QKV projection: one (S,D)@(D,3D) bf16 matmul, f32 accum ----
        # wq columns already carry the per-head even|odd de-interleave and the
        # 1/sqrt(head_dim) scale (folded at prep time).
        qkv = jnp.dot(xn.astype(bf16), wqkv_ref[...],
                      preferred_element_type=jnp.float32)   # (S, 3D) f32

        # ---- head-blocked layout (H, S, hd): one relayout per tensor ----
        def to_heads(t):                                    # (S, D) -> (H, S, hd)
            return jnp.swapaxes(t.reshape(seq, n_heads, head_dim), 0, 1)

        q3 = to_heads(qkv[:, :dim])
        k3 = to_heads(qkv[:, dim:2 * dim])
        v3 = to_heads(qkv[:, 2 * dim:])

        # ---- RoPE: pure elementwise (rotate_half on de-interleaved halves) ----
        cos = cs_ref[0][None]                               # (1, S, hd/2), bcast over H
        sin = cs_ref[1][None]

        def rope(t):                                        # (H, S, hd) f32
            te = t[..., :half]                              # "real" components
            to = t[..., half:]                              # "imag" components
            return jnp.concatenate(
                [te * cos - to * sin, te * sin + to * cos], axis=2)

        q3 = rope(q3)                                       # scale already folded in
        k3 = rope(k3)

        # ---- attention, batched over heads (leading batch dim for the MXU) ----
        s = jnp.einsum("hqd,hkd->hqk", q3.astype(bf16), k3.astype(bf16),
                       preferred_element_type=jnp.float32)  # (H, S, S)
        s = s - jnp.max(s, axis=-1, keepdims=True)
        p = jnp.exp(s)
        l = jnp.sum(p, axis=-1, keepdims=True)              # (H, S, 1)
        o3 = jnp.einsum("hqk,hkd->hqd", p.astype(bf16), v3.astype(bf16),
                        preferred_element_type=jnp.float32) # (H, S, hd)
        o3 = o3 / l                       # normalize after PV, exact divide

        # merge heads, single full-K output projection
        attn = jnp.swapaxes(o3, 0, 1).reshape(seq, dim)     # (S, D)
        attn_out = jnp.dot(attn.astype(bf16), wo_ref[...],
                           preferred_element_type=jnp.float32)
        h = x + attn_out                                    # first residual

        # ---- ffn RMSNorm ----
        ms2 = jnp.mean(h * h, axis=-1, keepdims=True)
        hn = h * lax.rsqrt(ms2 + eps) * wfn_ref[...]

        # ---- SwiGLU feed-forward: fused w1|w3 matmul, then w2 ----
        gu = jnp.dot(hn.astype(bf16), w13_ref[...],
                     preferred_element_type=jnp.float32)    # (S, 2F)
        g = gu[:, :ffn_dim]
        u = gu[:, ffn_dim:]
        # sigmoid via one tanh (single EUP transcendental, numerically stable)
        silu_g = g * (0.5 * (1.0 + jnp.tanh(0.5 * g)))
        ffn = jnp.dot((silu_g * u).astype(bf16), w2_ref[...],
                      preferred_element_type=jnp.float32)

        o_ref[0] = (h + ffn).astype(o_ref.dtype)            # second residual

    return kernel


# -----------------------------------------------------------------------------
# One-time parameter preparation (outside the jitted forward)
# -----------------------------------------------------------------------------
def prepare_params(params, n_heads):
    """Fuse / cast / permute weights once at parameter-load time."""
    bf16 = jnp.bfloat16
    D = params["wq"].shape[0]
    hd = D // n_heads
    scale = 1.0 / math.sqrt(hd)
    # Per-head de-interleave of wq/wk output columns: [even comps | odd comps].
    # Scores are invariant to this (consistent) permutation of the head dim.
    perm = np.arange(D).reshape(n_heads, hd // 2, 2).transpose(0, 2, 1).reshape(-1)
    wq = params["wq"][:, perm] * scale      # fold 1/sqrt(hd) into q projection
    wk = params["wk"][:, perm]
    return {
        "wan": jnp.asarray(params["wan"], jnp.float32),
        "wfn": jnp.asarray(params["wfn"], jnp.float32),
        "wqkv": jnp.concatenate([wq, wk, params["wv"]], axis=1).astype(bf16),
        "wo": params["wo"].astype(bf16),
        "w13": jnp.concatenate([params["w1"], params["w3"]], axis=1).astype(bf16),
        "w2": params["w2"].astype(bf16),
    }


def prepare_rope(freqs_complex):
    """Pack cos/sin into a single (2, S, head_dim//2) f32 table."""
    cos = jnp.real(freqs_complex).astype(jnp.float32)
    sin = jnp.imag(freqs_complex).astype(jnp.float32)
    return jnp.stack([cos, sin], axis=0)


# -----------------------------------------------------------------------------
# Wrapper
# -----------------------------------------------------------------------------
def encoder_block_pallas(x, rope_cs, prep, *, n_heads, eps=1e-5):
    B, S, D = x.shape
    head_dim = D // n_heads
    F = prep["w2"].shape[0]

    kernel = _make_kernel(n_heads, head_dim, D, F, eps)

    def const(shape):   # grid-invariant input (weights / RoPE tables)
        zeros = (0,) * len(shape)
        return pl.BlockSpec(shape, lambda b, _z=zeros: _z)

    return pl.pallas_call(
        kernel,
        out_shape=jax.ShapeDtypeStruct((B, S, D), x.dtype),
        grid=(B,),
        in_specs=[
            pl.BlockSpec((1, S, D), lambda b: (b, 0, 0)),   # x
            const((2, S, head_dim // 2)),                   # cos|sin packed
            const((1, D)),                                  # attention_norm w
            const((1, D)),                                  # ffn_norm w
            const((D, 3 * D)),                              # wq|wk|wv (bf16)
            const((D, D)),                                  # wo (bf16)
            const((D, 2 * F)),                              # w1|w3 (bf16)
            const((F, D)),                                  # w2 (bf16)
        ],
        out_specs=pl.BlockSpec((1, S, D), lambda b: (b, 0, 0)),
        compiler_params=pltpu.CompilerParams(
            dimension_semantics=("parallel",),              # B shards over v7x TCs
            vmem_limit_bytes=32 * 1024 * 1024),
    )(x, rope_cs, prep["wan"], prep["wfn"],
      prep["wqkv"], prep["wo"], prep["w13"], prep["w2"])


# -----------------------------------------------------------------------------
# Pure-JAX reference (mirrors the PyTorch forward, complex RoPE form, f32)
# -----------------------------------------------------------------------------
def encoder_block_ref(x, freqs_complex, p, *, n_heads, eps=1e-5):
    B, S, D = x.shape
    hd = D // n_heads

    def rms(t, w):
        return t * lax.rsqrt(jnp.mean(t * t, -1, keepdims=True) + eps) * w

    xn = rms(x, p["wan"][0])
    q = xn @ p["wq"]; k = xn @ p["wk"]; v = xn @ p["wv"]

    def rope(t):
        t = t.reshape(B, S, n_heads, hd // 2, 2)
        tc = lax.complex(t[..., 0], t[..., 1])
        tr = tc * freqs_complex[None, :, None, :]
        return jnp.stack([jnp.real(tr), jnp.imag(tr)], axis=-1).reshape(B, S, D)

    q = rope(q); k = rope(k)
    qh = q.reshape(B, S, n_heads, hd).transpose(0, 2, 1, 3)
    kh = k.reshape(B, S, n_heads, hd).transpose(0, 2, 1, 3)
    vh = v.reshape(B, S, n_heads, hd).transpose(0, 2, 1, 3)
    s = jnp.einsum("bhqd,bhkd->bhqk", qh, kh) / math.sqrt(hd)
    pmat = jax.nn.softmax(s, axis=-1)
    o = jnp.einsum("bhqk,bhkd->bhqd", pmat, vh).transpose(0, 2, 1, 3).reshape(B, S, D)
    h = x + o @ p["wo"]
    hn = rms(h, p["wfn"][0])
    ffn = (jax.nn.silu(hn @ p["w1"]) * (hn @ p["w3"])) @ p["w2"]
    return h + ffn


# -----------------------------------------------------------------------------
# Main
# -----------------------------------------------------------------------------
if __name__ == "__main__":
    # ModelArgs (small, synthetic): dim=32, n_heads=4, multiple_of=16, norm_eps=1e-5
    B, S, D, H = 2, 8, 32, 4
    HD = D // H
    EPS = 1e-5
    START_POS = 0
    # LLaMA FeedForward hidden size: 4*dim -> 2/3 -> round up to multiple_of
    hidden = 4 * D
    hidden = int(2 * hidden / 3)
    multiple_of = 16
    F = multiple_of * ((hidden + multiple_of - 1) // multiple_of)   # 96

    key = jax.random.PRNGKey(0)
    keys = jax.random.split(key, 9)
    wscale = 0.05
    params = {
        "wan": jnp.ones((1, D), jnp.float32),   # RMSNorm weights init to ones
        "wfn": jnp.ones((1, D), jnp.float32),
        "wq": wscale * jax.random.normal(keys[0], (D, D), jnp.float32),
        "wk": wscale * jax.random.normal(keys[1], (D, D), jnp.float32),
        "wv": wscale * jax.random.normal(keys[2], (D, D), jnp.float32),
        "wo": wscale * jax.random.normal(keys[3], (D, D), jnp.float32),
        "w1": wscale * jax.random.normal(keys[4], (D, F), jnp.float32),
        "w3": wscale * jax.random.normal(keys[5], (D, F), jnp.float32),
        "w2": wscale * jax.random.normal(keys[6], (F, D), jnp.float32),
    }

    x = jax.random.normal(keys[7], (B, S, D), jnp.float32)

    # freqs_complex: (S, head_dim//2) complex, positions [start_pos, start_pos+S)
    inv_freq = 1.0 / (10000.0 ** (np.arange(0, HD, 2, dtype=np.float32) / HD))
    pos = np.arange(START_POS, START_POS + S, dtype=np.float32)
    angles = np.outer(pos, inv_freq)                                # (S, HD//2)
    freqs_complex = jnp.asarray(np.exp(1j * angles).astype(np.complex64))

    # One-time prep (weight fusion / bf16 cast / RoPE column permutation).
    prep = prepare_params(params, H)
    rope_cs = prepare_rope(freqs_complex)

    fn = jax.jit(functools.partial(encoder_block_pallas, n_heads=H, eps=EPS))
    out = fn(x, rope_cs, prep)
    out = jax.block_until_ready(out)

    ref = encoder_block_ref(x, freqs_complex, params, n_heads=H, eps=EPS)
    # Tolerance accounts for bf16 matmul inputs (f32 accumulation); softmax and
    # silu now use exact divides / a single tanh, so no approx-reciprocal error.
    np.testing.assert_allclose(np.asarray(out), np.asarray(ref), rtol=2e-2, atol=2e-2)

    print("KERNEL_OK")
</pallas_src>

<mosaic_0001>
module attributes {stable_mosaic.version = 11 : i64} {
  func.func @kernel(%arg0: i32, %arg1: memref<1x8x32xf32, #tpu.memory_space<vmem>>, %arg2: memref<2x8x4xf32, #tpu.memory_space<vmem>>, %arg3: memref<1x32xf32, #tpu.memory_space<vmem>>, %arg4: memref<1x32xf32, #tpu.memory_space<vmem>>, %arg5: memref<32x96xbf16, #tpu.memory_space<vmem>>, %arg6: memref<32x32xbf16, #tpu.memory_space<vmem>>, %arg7: memref<32x192xbf16, #tpu.memory_space<vmem>>, %arg8: memref<96x32xbf16, #tpu.memory_space<vmem>>, %arg9: memref<1x8x32xf32, #tpu.memory_space<vmem>>) attributes {dimension_semantics = [#tpu.dimension_semantics<parallel>], iteration_bounds = array<i64: 2>, scalar_prefetch = 0 : i64, scratch_operands = 0 : i64, tpu.core_type = #tpu.core_type<tc>, window_params = [{transform_indices = @transform_0, window_bounds = array<i64: 1, 8, 32>}, {pipeline_mode = #tpu.pipeline_mode<synchronous>, transform_indices = @transform_1, window_bounds = array<i64: 2, 8, 4>}, {pipeline_mode = #tpu.pipeline_mode<synchronous>, transform_indices = @transform_2, window_bounds = array<i64: 1, 32>}, {pipeline_mode = #tpu.pipeline_mode<synchronous>, transform_indices = @transform_3, window_bounds = array<i64: 1, 32>}, {pipeline_mode = #tpu.pipeline_mode<synchronous>, transform_indices = @transform_4, window_bounds = array<i64: 32, 96>}, {pipeline_mode = #tpu.pipeline_mode<synchronous>, transform_indices = @transform_5, window_bounds = array<i64: 32, 32>}, {pipeline_mode = #tpu.pipeline_mode<synchronous>, transform_indices = @transform_6, window_bounds = array<i64: 32, 192>}, {pipeline_mode = #tpu.pipeline_mode<synchronous>, transform_indices = @transform_7, window_bounds = array<i64: 96, 32>}, {transform_indices = @transform_8, window_bounds = array<i64: 1, 8, 32>}]} {
    %c0 = arith.constant 0 : index
    %c0_0 = arith.constant 0 : index
    %c0_1 = arith.constant 0 : index
    %0 = vector.load %arg1[%c0, %c0_0, %c0_1] : memref<1x8x32xf32, #tpu.memory_space<vmem>>, vector<1x8x32xf32>
    %1 = vector.shape_cast %0 : vector<1x8x32xf32> to vector<8x32xf32>
    %2 = arith.mulf %1, %1 : vector<8x32xf32>
    %cst = arith.constant dense<0.000000e+00> : vector<8xf32>
    %3 = vector.multi_reduction <add>, %2, %cst [1] : vector<8x32xf32> to vector<8xf32>
    %4 = vector.shape_cast %3 : vector<8xf32> to vector<8x1xf32>
    %cst_2 = arith.constant 3.200000e+01 : f32
    %5 = vector.broadcast %cst_2 : f32 to vector<8x1xf32>
    %6 = arith.divf %4, %5 : vector<8x1xf32>
    %cst_3 = arith.constant 9.99999974E-6 : f32
    %7 = vector.broadcast %cst_3 : f32 to vector<8x1xf32>
    %8 = arith.addf %6, %7 : vector<8x1xf32>
    %9 = math.rsqrt %8 : vector<8x1xf32>
    %10 = vector.broadcast %9 : vector<8x1xf32> to vector<8x32xf32>
    %11 = arith.mulf %1, %10 : vector<8x32xf32>
    %c0_4 = arith.constant 0 : index
    %c0_5 = arith.constant 0 : index
    %12 = vector.load %arg3[%c0_4, %c0_5] : memref<1x32xf32, #tpu.memory_space<vmem>>, vector<1x32xf32>
    %13 = vector.broadcast %12 : vector<1x32xf32> to vector<8x32xf32>
    %14 = arith.mulf %11, %13 : vector<8x32xf32>
    %15 = arith.truncf %14 : vector<8x32xf32> to vector<8x32xbf16>
    %c0_6 = arith.constant 0 : index
    %c0_7 = arith.constant 0 : index
    %16 = vector.load %arg5[%c0_6, %c0_7] : memref<32x96xbf16, #tpu.memory_space<vmem>>, vector<32x96xbf16>
    %cst_8 = arith.constant dense<0.000000e+00> : vector<8x96xf32>
    %17 = tpu.matmul %15, %16, %cst_8 {dimension_numbers = #tpu.dot_dimension_numbers<[1], [0], [0], [1], [0, 0, 1, 1], [], []>} : vector<8x32xbf16>, vector<32x96xbf16>, vector<8x96xf32> -> vector<8x96xf32>
    %18 = vector.extract_strided_slice %17 {offsets = [0, 0], sizes = [8, 32], strides = [1, 1]} : vector<8x96xf32> to vector<8x32xf32>
    %19 = vector.shape_cast %18 : vector<8x32xf32> to vector<8x4x8xf32>
    %20 = tpu.transpose %19, [1, 0, 2] : vector<8x4x8xf32> -> vector<4x8x8xf32>
    %21 = vector.extract_strided_slice %17 {offsets = [0, 32], sizes = [8, 32], strides = [1, 1]} : vector<8x96xf32> to vector<8x32xf32>
    %22 = vector.shape_cast %21 : vector<8x32xf32> to vector<8x4x8xf32>
    %23 = tpu.transpose %22, [1, 0, 2] : vector<8x4x8xf32> -> vector<4x8x8xf32>
    %24 = vector.extract_strided_slice %17 {offsets = [0, 64], sizes = [8, 32], strides = [1, 1]} : vector<8x96xf32> to vector<8x32xf32>
    %25 = vector.shape_cast %24 : vector<8x32xf32> to vector<8x4x8xf32>
    %26 = tpu.transpose %25, [1, 0, 2] : vector<8x4x8xf32> -> vector<4x8x8xf32>
    %c0_9 = arith.constant 0 : index
    %c0_10 = arith.constant 0 : index
    %c0_11 = arith.constant 0 : index
    %27 = vector.load %arg2[%c0_9, %c0_10, %c0_11] : memref<2x8x4xf32, #tpu.memory_space<vmem>>, vector<1x8x4xf32>
    %28 = vector.shape_cast %27 : vector<1x8x4xf32> to vector<8x4xf32>
    %29 = vector.shape_cast %28 : vector<8x4xf32> to vector<1x8x4xf32>
    %c1 = arith.constant 1 : index
    %c0_12 = arith.constant 0 : index
    %c0_13 = arith.constant 0 : index
    %30 = vector.load %arg2[%c1, %c0_12, %c0_13] : memref<2x8x4xf32, #tpu.memory_space<vmem>>, vector<1x8x4xf32>
    %31 = vector.shape_cast %30 : vector<1x8x4xf32> to vector<8x4xf32>
    %32 = vector.shape_cast %31 : vector<8x4xf32> to vector<1x8x4xf32>
    %33 = vector.extract_strided_slice %20 {offsets = [0, 0, 0], sizes = [4, 8, 4], strides = [1, 1, 1]} : vector<4x8x8xf32> to vector<4x8x4xf32>
    %34 = vector.extract_strided_slice %20 {offsets = [0, 0, 4], sizes = [4, 8, 4], strides = [1, 1, 1]} : vector<4x8x8xf32> to vector<4x8x4xf32>
    %35 = vector.broadcast %29 : vector<1x8x4xf32> to vector<4x8x4xf32>
    %36 = arith.mulf %33, %35 : vector<4x8x4xf32>
    %37 = vector.broadcast %32 : vector<1x8x4xf32> to vector<4x8x4xf32>
    %38 = arith.mulf %34, %37 : vector<4x8x4xf32>
    %39 = arith.subf %36, %38 : vector<4x8x4xf32>
    %40 = vector.broadcast %32 : vector<1x8x4xf32> to vector<4x8x4xf32>
    %41 = arith.mulf %33, %40 : vector<4x8x4xf32>
    %42 = vector.broadcast %29 : vector<1x8x4xf32> to vector<4x8x4xf32>
    %43 = arith.mulf %34, %42 : vector<4x8x4xf32>
    %44 = arith.addf %41, %43 : vector<4x8x4xf32>
    %45 = tpu.concatenate %39, %44 in 2 : vector<4x8x4xf32>, vector<4x8x4xf32> -> vector<4x8x8xf32>
    %46 = vector.extract_strided_slice %23 {offsets = [0, 0, 0], sizes = [4, 8, 4], strides = [1, 1, 1]} : vector<4x8x8xf32> to vector<4x8x4xf32>
    %47 = vector.extract_strided_slice %23 {offsets = [0, 0, 4], sizes = [4, 8, 4], strides = [1, 1, 1]} : vector<4x8x8xf32> to vector<4x8x4xf32>
    %48 = vector.broadcast %29 : vector<1x8x4xf32> to vector<4x8x4xf32>
    %49 = arith.mulf %46, %48 : vector<4x8x4xf32>
    %50 = vector.broadcast %32 : vector<1x8x4xf32> to vector<4x8x4xf32>
    %51 = arith.mulf %47, %50 : vector<4x8x4xf32>
    %52 = arith.subf %49, %51 : vector<4x8x4xf32>
    %53 = vector.broadcast %32 : vector<1x8x4xf32> to vector<4x8x4xf32>
    %54 = arith.mulf %46, %53 : vector<4x8x4xf32>
    %55 = vector.broadcast %29 : vector<1x8x4xf32> to vector<4x8x4xf32>
    %56 = arith.mulf %47, %55 : vector<4x8x4xf32>
    %57 = arith.addf %54, %56 : vector<4x8x4xf32>
    %58 = tpu.concatenate %52, %57 in 2 : vector<4x8x4xf32>, vector<4x8x4xf32> -> vector<4x8x8xf32>
    %59 = arith.truncf %45 : vector<4x8x8xf32> to vector<4x8x8xbf16>
    %60 = arith.truncf %58 : vector<4x8x8xf32> to vector<4x8x8xbf16>
    "tpu.trace_start"() <{level = 10 : i32, message = "hqd,hkd->hqk"}> : () -> ()
    %cst_14 = arith.constant dense<0.000000e+00> : vector<4x8x8xf32>
    %61 = tpu.matmul %59, %60, %cst_14 {dimension_numbers = #tpu.dot_dimension_numbers<[2], [2], [1], [1], [0, 0, 0, 1, 1, 1], [0], [0]>} : vector<4x8x8xbf16>, vector<4x8x8xbf16>, vector<4x8x8xf32> -> vector<4x8x8xf32>
    "tpu.trace_stop"() : () -> ()
    %cst_15 = arith.constant dense<0xFF800000> : vector<4x8xf32>
    %62 = vector.multi_reduction <maximumf>, %61, %cst_15 [2] : vector<4x8x8xf32> to vector<4x8xf32>
    %63 = vector.shape_cast %62 : vector<4x8xf32> to vector<4x8x1xf32>
    %64 = vector.broadcast %63 : vector<4x8x1xf32> to vector<4x8x8xf32>
    %65 = arith.subf %61, %64 : vector<4x8x8xf32>
    %66 = math.exp %65 : vector<4x8x8xf32>
    %cst_16 = arith.constant dense<0.000000e+00> : vector<4x8xf32>
    %67 = vector.multi_reduction <add>, %66, %cst_16 [2] : vector<4x8x8xf32> to vector<4x8xf32>
    %68 = vector.shape_cast %67 : vector<4x8xf32> to vector<4x8x1xf32>
    %69 = arith.truncf %66 : vector<4x8x8xf32> to vector<4x8x8xbf16>
    %70 = arith.truncf %26 : vector<4x8x8xf32> to vector<4x8x8xbf16>
    "tpu.trace_start"() <{level = 10 : i32, message = "hqk,hkd->hqd"}> : () -> ()
    %cst_17 = arith.constant dense<0.000000e+00> : vector<4x8x8xf32>
    %71 = tpu.matmul %69, %70, %cst_17 {dimension_numbers = #tpu.dot_dimension_numbers<[2], [1], [1], [2], [0, 0, 0, 1, 1, 2], [0], [0]>} : vector<4x8x8xbf16>, vector<4x8x8xbf16>, vector<4x8x8xf32> -> vector<4x8x8xf32>
    "tpu.trace_stop"() : () -> ()
    %72 = vector.broadcast %68 : vector<4x8x1xf32> to vector<4x8x8xf32>
    %73 = arith.divf %71, %72 : vector<4x8x8xf32>
    %74 = tpu.transpose %73, [1, 0, 2] : vector<4x8x8xf32> -> vector<8x4x8xf32>
    %75 = vector.shape_cast %74 : vector<8x4x8xf32> to vector<8x32xf32>
    %76 = arith.truncf %75 : vector<8x32xf32> to vector<8x32xbf16>
    %c0_18 = arith.constant 0 : index
    %c0_19 = arith.constant 0 : index
    %77 = vector.load %arg6[%c0_18, %c0_19] : memref<32x32xbf16, #tpu.memory_space<vmem>>, vector<32x32xbf16>
    %cst_20 = arith.constant dense<0.000000e+00> : vector<8x32xf32>
    %78 = tpu.matmul %76, %77, %cst_20 {dimension_numbers = #tpu.dot_dimension_numbers<[1], [0], [0], [1], [0, 0, 1, 1], [], []>} : vector<8x32xbf16>, vector<32x32xbf16>, vector<8x32xf32> -> vector<8x32xf32>
    %79 = arith.addf %1, %78 : vector<8x32xf32>
    %80 = arith.mulf %79, %79 : vector<8x32xf32>
    %cst_21 = arith.constant dense<0.000000e+00> : vector<8xf32>
    %81 = vector.multi_reduction <add>, %80, %cst_21 [1] : vector<8x32xf32> to vector<8xf32>
    %82 = vector.shape_cast %81 : vector<8xf32> to vector<8x1xf32>
    %cst_22 = arith.constant 3.200000e+01 : f32
    %83 = vector.broadcast %cst_22 : f32 to vector<8x1xf32>
    %84 = arith.divf %82, %83 : vector<8x1xf32>
    %cst_23 = arith.constant 9.99999974E-6 : f32
    %85 = vector.broadcast %cst_23 : f32 to vector<8x1xf32>
    %86 = arith.addf %84, %85 : vector<8x1xf32>
    %87 = math.rsqrt %86 : vector<8x1xf32>
    %88 = vector.broadcast %87 : vector<8x1xf32> to vector<8x32xf32>
    %89 = arith.mulf %79, %88 : vector<8x32xf32>
    %c0_24 = arith.constant 0 : index
    %c0_25 = arith.constant 0 : index
    %90 = vector.load %arg4[%c0_24, %c0_25] : memref<1x32xf32, #tpu.memory_space<vmem>>, vector<1x32xf32>
    %91 = vector.broadcast %90 : vector<1x32xf32> to vector<8x32xf32>
    %92 = arith.mulf %89, %91 : vector<8x32xf32>
    %93 = arith.truncf %92 : vector<8x32xf32> to vector<8x32xbf16>
    %c0_26 = arith.constant 0 : index
    %c0_27 = arith.constant 0 : index
    %94 = vector.load %arg7[%c0_26, %c0_27] : memref<32x192xbf16, #tpu.memory_space<vmem>>, vector<32x192xbf16>
    %cst_28 = arith.constant dense<0.000000e+00> : vector<8x192xf32>
    %95 = tpu.matmul %93, %94, %cst_28 {dimension_numbers = #tpu.dot_dimension_numbers<[1], [0], [0], [1], [0, 0, 1, 1], [], []>} : vector<8x32xbf16>, vector<32x192xbf16>, vector<8x192xf32> -> vector<8x192xf32>
    %96 = vector.extract_strided_slice %95 {offsets = [0, 0], sizes = [8, 96], strides = [1, 1]} : vector<8x192xf32> to vector<8x96xf32>
    %97 = vector.extract_strided_slice %95 {offsets = [0, 96], sizes = [8, 96], strides = [1, 1]} : vector<8x192xf32> to vector<8x96xf32>
    %cst_29 = arith.constant 5.000000e-01 : f32
    %98 = vector.broadcast %cst_29 : f32 to vector<8x96xf32>
    %99 = arith.mulf %98, %96 : vector<8x96xf32>
    %100 = math.tanh %99 : vector<8x96xf32>
    %cst_30 = arith.constant 1.000000e+00 : f32
    %101 = vector.broadcast %cst_30 : f32 to vector<8x96xf32>
    %102 = arith.addf %101, %100 : vector<8x96xf32>
    %cst_31 = arith.constant 5.000000e-01 : f32
    %103 = vector.broadcast %cst_31 : f32 to vector<8x96xf32>
    %104 = arith.mulf %103, %102 : vector<8x96xf32>
    %105 = arith.mulf %96, %104 : vector<8x96xf32>
    %106 = arith.mulf %105, %97 : vector<8x96xf32>
    %107 = arith.truncf %106 : vector<8x96xf32> to vector<8x96xbf16>
    %c0_32 = arith.constant 0 : index
    %c0_33 = arith.constant 0 : index
    %108 = vector.load %arg8[%c0_32, %c0_33] : memref<96x32xbf16, #tpu.memory_space<vmem>>, vector<96x32xbf16>
    %cst_34 = arith.constant dense<0.000000e+00> : vector<8x32xf32>
    %109 = tpu.matmul %107, %108, %cst_34 {dimension_numbers = #tpu.dot_dimension_numbers<[1], [0], [0], [1], [0, 0, 1, 1], [], []>} : vector<8x96xbf16>, vector<96x32xbf16>, vector<8x32xf32> -> vector<8x32xf32>
    %110 = arith.addf %79, %109 : vector<8x32xf32>
    %c0_35 = arith.constant 0 : index
    %c0_36 = arith.constant 0 : index
    %c0_37 = arith.constant 0 : index
    %111 = vector.load %arg9[%c0_35, %c0_36, %c0_37] : memref<1x8x32xf32, #tpu.memory_space<vmem>>, vector<1x8x32xf32>
    %112 = vector.shape_cast %111 : vector<1x8x32xf32> to vector<8x32xf32>
    %113 = vector.shape_cast %110 : vector<8x32xf32> to vector<1x8x32xf32>
    tpu.vector_store %arg9[%c0_35, %c0_36, %c0_37], %113 {strides = array<i32>} : memref<1x8x32xf32, #tpu.memory_space<vmem>>, vector<1x8x32xf32>,
    return
  }
  func.func @transform_0(%arg0: i32) -> (i32, i32, i32) {
    %c0_i32 = arith.constant 0 : i32
    %c0_i32_0 = arith.constant 0 : i32
    %c0_i32_1 = arith.constant 0 : i32
    return %arg0, %c0_i32, %c0_i32_0 : i32, i32, i32
  }
  func.func @transform_1(%arg0: i32) -> (i32, i32, i32) {
    %c0_i32 = arith.constant 0 : i32
    %c0_i32_0 = arith.constant 0 : i32
    %c0_i32_1 = arith.constant 0 : i32
    %c0_i32_2 = arith.constant 0 : i32
    return %c0_i32, %c0_i32_0, %c0_i32_1 : i32, i32, i32
  }
  func.func @transform_2(%arg0: i32) -> (i32, i32) {
    %c0_i32 = arith.constant 0 : i32
    %c0_i32_0 = arith.constant 0 : i32
    %c0_i32_1 = arith.constant 0 : i32
    return %c0_i32, %c0_i32_0 : i32, i32
  }
  func.func @transform_3(%arg0: i32) -> (i32, i32) {
    %c0_i32 = arith.constant 0 : i32
    %c0_i32_0 = arith.constant 0 : i32
    %c0_i32_1 = arith.constant 0 : i32
    return %c0_i32, %c0_i32_0 : i32, i32
  }
  func.func @transform_4(%arg0: i32) -> (i32, i32) {
    %c0_i32 = arith.constant 0 : i32
    %c0_i32_0 = arith.constant 0 : i32
    %c0_i32_1 = arith.constant 0 : i32
    return %c0_i32, %c0_i32_0 : i32, i32
  }
  func.func @transform_5(%arg0: i32) -> (i32, i32) {
    %c0_i32 = arith.constant 0 : i32
    %c0_i32_0 = arith.constant 0 : i32
    %c0_i32_1 = arith.constant 0 : i32
    return %c0_i32, %c0_i32_0 : i32, i32
  }
  func.func @transform_6(%arg0: i32) -> (i32, i32) {
    %c0_i32 = arith.constant 0 : i32
    %c0_i32_0 = arith.constant 0 : i32
    %c0_i32_1 = arith.constant 0 : i32
    return %c0_i32, %c0_i32_0 : i32, i32
  }
  func.func @transform_7(%arg0: i32) -> (i32, i32) {
    %c0_i32 = arith.constant 0 : i32
    %c0_i32_0 = arith.constant 0 : i32
    %c0_i32_1 = arith.constant 0 : i32
    return %c0_i32, %c0_i32_0 : i32, i32
  }
  func.func @transform_8(%arg0: i32) -> (i32, i32, i32) {
    %c0_i32 = arith.constant 0 : i32
    %c0_i32_0 = arith.constant 0 : i32
    %c0_i32_1 = arith.constant 0 : i32
    return %arg0, %c0_i32, %c0_i32_0 : i32, i32, i32
  }
}

</mosaic_0001>

<bundles_post_ra>
// kernel: encoder_block_pallas.1
= control target key start
LH: loop header
LB: loop body
LE: loop exit
PB: predicated region body
PF: predicated region fallthrough
CT: control target
= control target key end

     0   :  { %13 = vsyncpa [#allocation3], 0  ;;  %s2734_s0 = inlined_call_operand.vmem [shape: f32[2,8,32], index: 0, kind: input, shape index: {}]   ;;  %s2735_s1 = inlined_call_operand.vmem [shape: f32[2,8,4], index: 1, kind: input, shape index: {}]   ;;  %s2736_s2 = inlined_call_operand.vmem [shape: f32[1,32], index: 2, kind: input, shape index: {}]   ;;  %s2737_s3 = inlined_call_operand.vmem [shape: f32[1,32], index: 3, kind: input, shape index: {}]   ;;  %s2738_s4 = inlined_call_operand.vmem [shape: bf16[32,96], index: 4, kind: input, shape index: {}]   ;;  %s2739_s5 = inlined_call_operand.vmem [shape: bf16[32,32], index: 5, kind: input, shape index: {}]   ;;  %s2740_s6 = inlined_call_operand.vmem [shape: bf16[32,192], index: 6, kind: input, shape index: {}]   ;;  %s2741_s7 = inlined_call_operand.vmem [shape: bf16[96,32], index: 7, kind: input, shape index: {}]   ;;  %s2742_s8 = inlined_call_operand.hbm [shape: f32[2,8,32], index: 8, kind: output, shape index: {}]  }
   0x1   :  { %15 = vsyncpa [#allocation3 + $0x1], 0  ;;  %s2288_s27 = smov 0   ;;  %s2290_s28 = smov 0  }
   0x2   :  { %s2292_s29 = smov 0   ;;  %s2294_s30 = smov 0  }
   0x3 LB: > { %s2309_s9 = sadd.s32 4294967295, %s2224_s30   ;;  %s1898_s10 = sadd.s32 4294967294, %s2224_s30   ;;  %s2224_s30 = sphi %s2294_s30, %s2748_s30   ;;  %s2220_s29 = sphi %s2292_s29, %s2747_s29   ;;  %s2216_s28 = sphi %s2290_s28, %s2746_s28   ;;  %s2212_s27 = sphi %s2288_s27, %s2745_s27  }
   0x4   : > { %s2313_s11 = sadd.s32 1, %s2224_s30   ;;  %s201_s12 = sadd.s32 1, %s2220_s29 }
   0x5   : > { %s198_s13 = ssub.s32 %s2224_s30, %s2313_s11  ;;  %p211_p0 = scmp.ne.s32.totalorder %s2220_s29, %s2216_s28 }
   0x6   : > { %p199_p1 = scmp.eq.s32.totalorder %s198_s13, 0  ;;  %p212_p2 = scmp.eq.s32.totalorder %s2309_s9, 1 }
   0x7   : > { %p217_p3 = scmp.ne.s32.totalorder %s2216_s28, %s2212_s27  ;;  %p218_p4 = scmp.eq.s32.totalorder %s1898_s10, 1 }
   0x8   : > { %s2324_s14 = scalar_select %p199_p1, %s2220_s29, %s201_s12  }
   0x9   : > { %p2326_p5 = por %p212_p2, %p211_p0  ;;  %p2330_p6 = por %p218_p4, %p217_p3 }
   0xa   : > { %p1901_p7 = scmp.ge.s32.totalorder %s2224_s30, 1  ;;  %p264_p8 = scmp.lt.s32.totalorder %s2224_s30, 3 }
   0xc   : > { %p265_p9 = pnand %p1901_p7, %p264_p8 }
   0xd   : > { %p297_p10 = scmp.lt.s32.totalorder (!%p265_p9), %s2309_s9, 1  ;;  %vm304_vm0 = vcmask (!%p265_p9), 261120   ;;  %v2124_v3 = vld [vmem:[%s2738_s4] sm:$0xff] (!%p265_p9)   ;;  %v2226_v4 = vmov (!%p265_p9), 0.0   ;;  %vm2227_vm1 = vmmov (!%p265_p9), 0   ;;  %v2125_v5 = vld [vmem:[%s2738_s4 + $0x8] sm:$0xff] (!%p265_p9)   ;;  %v396_v25 = vlaneseq (!%p265_p9) }
   0xe   : > { %268 = sbr.rel (%p265_p9) target bundleno = 2636 (0xa4c), region = 52  ;;  %1974 = vmatprep.subr.bf16.mxu0 (!%p265_p9), %v2226_v4  ;;  %1978 = vmatprep.mubr.msk.bf16.mxu0 (!%p265_p9), %vm2227_vm1, %v2226_v4  ;;  %v1904_v10 = vld [vmem:[%s2736_s2] ss:$0 sm:$0xff] (!%p265_p9)  ;;  %s2228_s12 = smov (!%p265_p9), 112   ;;  %v2374_v17 = vld [vmem:[%s2735_s1 + $0x8] sm:$0xff] (!%p265_p9)  ;;  %vm906_vm2 = vcmask (!%p265_p9), 31744  }
   0xf   : > { %1975 = vmatpush3.bf16.msra.mxu0 (!%p265_p9), %v2124_v3  ;;  %1994 = vmatprep.subr.bf16.mxu1 (!%p265_p9), %v2226_v4  ;;  %s2229_s13 = smov (!%p265_p9), 120   ;;  %s2230_s19 = smov (!%p265_p9), 104   ;;  %v2392_v22 = vld [vmem:[%s2735_s1] sm:$0xff] (!%p265_p9)  ;;  %v2233_v23 = vmov (!%p265_p9), 1983009808   ;;  %v397_v27 = vshrl.u32 (!%p265_p9), %v396_v25, 7 }
  0x10   : > { %1976 = vmatprep.subr.bf16.mxu0 (!%p265_p9), %v2226_v4  ;;  %1996 = vmatprep.mubr.msk.bf16.mxu1 (!%p265_p9), %vm2227_vm1, %v2226_v4  ;;  %s2231_s20 = smov (!%p265_p9), 4   ;;  %v394_v24 = vunpack.c.l.s4 (!%p265_p9), %v2233_v23  ;;  %v2234_v28 = vmov (!%p265_p9), 1934713408   ;;  %s2235_s24 = smov (!%p265_p9), 124   ;;  %vm995_vm3 = vcmask (!%p265_p9), 64512   ;;  %vm1227_vm4 = vcmask (!%p265_p9), 1043456  }
  0x11   : > { %v426_v29 = vunpack.c.l.s4 (!%p265_p9), %v2234_v28  ;;  %s2236_s25 = smov (!%p265_p9), 64   ;;  %vm1566_vm5 = vcmask (!%p265_p9), 130048   ;;  %vm1568_vm6 = vcmask (!%p265_p9), 195584   ;;  %vm1779_vm7 = vcmask (!%p265_p9), 785408   ;;  %s2242_s26 = smov (!%p265_p9), [#allocation2]  }
  0x12   : > { %v395_v26 = vunpack.c.0.s8 (!%p265_p9), %v394_v24  ;;  %s2166_s10 = sshll.u32 (!%p265_p9), %s2242_s26, 4  ;;  %s2167_s10 = int_to_ptr.vmem [resolvable:$false] %s2166_s10 }
  0x13   : > { %1977 = vmatpush3.bf16.msra.mxu0 (!%p265_p9), %v2125_v5  ;;  %v427_v35 = vunpack.c.0.s8 (!%p265_p9), %v426_v29 }
  0x14   : > { %1982 = vmatprep.subr.bf16.mxu0 (!%p265_p9), %v2226_v4  ;;  %v2400_v32 = vsub.s32 (!%p265_p9), %v395_v26, %v397_v27 }
  0x15   : > { %s298_s17 = scalar_select %p297_p10, %s2309_s9, 1  ;;  %v2410_v40 = vsub.s32 %v427_v35, %v397_v27 }
  0x17   : > { %s1903_s18 = sshll.u32 %s298_s17, 3  ;;  %s2237_s17 = smov 16  }
  0x18   : > { %s300_s21 = scalar_lea.vmem %s2734_s0, %s1903_s18  ;;  %s2238_s18 = smov 8  }
  0x19   : > { %v2341_v0 = vld [vmem:[%s300_s21] sm:$0xff]  ;;  %s2232_s21 = smov 96  }
  0x1a   : > { %v303_v1 = vmul.f32 %v2341_v0, %v2341_v0 }
  0x1c   : > { %v305_v2 = vsel %vm304_vm0, %v303_v1, 0.0 }
  0x1d   : > { %306 = vadd.xlane.f32.xlu0 %v305_v2 }
  0xaa   : > { %v307_v6 = vpop.xlane.xlu0 %306 }
  0xab   : > { %v309_v7 = vmul.f32 0.03125, %v307_v6 }
  0xad   : > { %v310_v8 = vadd.f32 1e-05, %v309_v7 }
  0xaf   : > { %2140 = vrsqrt.f32 %v310_v8 }
  0xb9   : > { %v2141_v9 = vpop.eup %2140 }
  0xba   : > { %v312_v11 = vmul.f32 %v2141_v9, %v2341_v0 }
  0xbc   : > { %v320_v12 = vmul.f32 %v1904_v10, %v312_v11 }
  0xbe   : > { %v321_v13 = vpack.c.bf16 %v320_v12, %v320_v12 }
  0xc0   : > { %1979 = vmatmul.mubr.msk.bf16.vlgmr.msra.gmra.mrb[0].mxu0 %vm304_vm0, %v321_v13 }
  0xc1   : > { %1984 = vmatprep.mubr.msk.bf16.mxu0 %vm2227_vm1, %v2226_v4 }
 0x193   : > { %v2367_v14 = vpop.f32.mrb[0].mxu0 }
 0x194   : > { %385 = vrot.lane.b32.xlu1 %v2367_v14, %s2228_s12  ;;  %382 = vrot.lane.b32.xlu0 %v2367_v14, %s2229_s13  ;;  %v1980_v15 = vpop.f32.mrb[1].mxu0  ;;  %s2241_s13 = smov 32   ;;  %s2168_s12 = scalar_lea.vmem %s2167_s10, 256 }
 0x195   : > { %v378_v16 = vpop.f32.mrb[2].mxu0 }
 0x196   : > { %v1981_v18 = vpop.f32.mrb[3].mxu0 }
 0x198   : > { %388 = vrot.lane.b32.xlu1 %v2367_v14, %s2230_s19  ;;  %831 = vrot.lane.b32.xlu0 %v2374_v17, %s2231_s20  ;;  %s2239_s19 = smov 24  }
 0x19c   : > { %527 = vrot.lane.b32.xlu1 %v2367_v14, %s2232_s21 }
 0x206   : > { %v2380_v19 = vpop.permute.xlu0 %382  ;;  %v2383_v20 = vpop.permute.xlu1 %385 }
 0x207   : > { %529 = vrot.lane.b32.xlu1 %v2380_v19, %s2232_s21  ;;  %v391_v33 = vcombine.low %v2367_v14, %v2383_v20  ;;  %v392_v34 = vcombine.high %v2367_v14, %v2383_v20 }
 0x209   : > { %v399_v38 = vrot.slane %v391_v33, %v2400_v32  ;;  %v406_v39 = vrot.slane %v392_v34, %v2400_v32 }
 0x20a   : > { %v2386_v21 = vpop.permute.xlu1 %388 }
 0x20b   : > { %531 = vrot.lane.b32.xlu1 %v2383_v20, %s2232_s21  ;;  %v407_v30 = vcombine.low %v2380_v19, %v2386_v21  ;;  %v408_v31 = vcombine.high %v2380_v19, %v2386_v21 }
 0x20d   : > { %v415_v36 = vrot.slane %v407_v30, %v2400_v32  ;;  %v422_v37 = vrot.slane %v408_v31, %v2400_v32 }
 0x20e   : > { %v528_v53 = vpop.permute.xlu1 %527 }
 0x20f   : > { %533 = vrot.lane.b32.xlu1 %v2386_v21, %s2232_s21  ;;  %v423_v41 = vcombine.low %v399_v38, %v415_v36  ;;  %v424_v42 = vcombine.high %v399_v38, %v415_v36  ;;  %v439_v43 = vcombine.low %v406_v39, %v422_v37  ;;  %v440_v44 = vcombine.high %v406_v39, %v422_v37 }
 0x211   : > { %v431_v45 = vrot.slane %v423_v41, %v2410_v40  ;;  %v438_v46 = vrot.slane %v424_v42, %v2410_v40  ;;  %v447_v47 = vrot.slane %v439_v43, %v2410_v40  ;;  %v454_v48 = vrot.slane %v440_v44, %v2410_v40 }
 0x213   : > { %863 = vrot.lane.b32.xlu1 %v2392_v22, %s2231_s20  ;;  %v459_v49 = vcombine.low %v431_v45, %v438_v46  ;;  %v1908_v50 = vcombine.high %v431_v45, %v438_v46  ;;  %v475_v51 = vcombine.low %v447_v47, %v454_v48  ;;  %v1909_v52 = vcombine.high %v447_v47, %v454_v48 }
 0x215   : > { %v466_v54 = vrot.slane %v459_v49, %v2400_v32  ;;  %v474_v55 = vrot.slane %v1908_v50, %v2400_v32  ;;  %v482_v56 = vrot.slane %v475_v51, %v2400_v32  ;;  %v490_v57 = vrot.slane %v1909_v52, %v2400_v32 }
 0x217   : > { %v491_v60 = vcombine.low %v466_v54, %v474_v55  ;;  %v507_v61 = vcombine.low %v482_v56, %v490_v57  ;;  %v492_v39 = vcombine.high %v466_v54, %v474_v55  ;;  %v508_v41 = vcombine.high %v482_v56, %v490_v57 }
 0x219   : > { %v499_v2 = vrot.slane %v491_v60, %v2410_v40  ;;  %v515_v3 = vrot.slane %v507_v61, %v2410_v40  ;;  %v506_v52 = vrot.slane %v492_v39, %v2410_v40 }
 0x21b   : > { %v2426_v12 = vcombine.low %v499_v2, %v515_v3  ;;  %v2434_v28 = vcombine.high %v499_v2, %v515_v3 }
 0x279   : > { %v530_v58 = vpop.permute.xlu1 %529 }
 0x27d   : > { %v532_v59 = vpop.permute.xlu1 %531 }
 0x27e   : > { %v539_v62 = vcombine.low %v528_v53, %v532_v59  ;;  %v540_v63 = vcombine.high %v528_v53, %v532_v59  ;;  %v522_v53 = vrot.slane %v508_v41, %v2410_v40 }
 0x280   : > { %v547_v7 = vrot.slane %v539_v62, %v2400_v32  ;;  %v554_v8 = vrot.slane %v540_v63, %v2400_v32  ;;  %v2458_v57 = vcombine.high %v506_v52, %v522_v53  ;;  %v2468_v62 = vcombine.low %v506_v52, %v522_v53 }
 0x281   : > { %v534_v1 = vpop.permute.xlu1 %533 }
 0x282   : > { %v555_v5 = vcombine.low %v530_v58, %v534_v1  ;;  %v556_v6 = vcombine.high %v530_v58, %v534_v1  ;;  %v832_v1 = vpop.permute.xlu0 %831  ;;  %v860_v39 = vmul.f32 %v2374_v17, %v2468_v62 }
 0x283   : > { %v834_v3 = vmul.f32 %v832_v1, %v2426_v12 }
 0x284   : > { %v563_v9 = vrot.slane %v555_v5, %v2400_v32  ;;  %v570_v10 = vrot.slane %v556_v6, %v2400_v32 }
 0x285   : > { %v864_v11 = vpop.permute.xlu1 %863 }
 0x286   : > { %v571_v13 = vcombine.low %v547_v7, %v563_v9  ;;  %v572_v15 = vcombine.high %v547_v7, %v563_v9  ;;  %v587_v16 = vcombine.low %v554_v8, %v570_v10  ;;  %v588_v18 = vcombine.high %v554_v8, %v570_v10 }
 0x287   : > { %v866_v23 = vmul.f32 %v864_v11, %v2426_v12  ;;  %v867_v34 = vmul.f32 %v864_v11, %v2434_v28  ;;  %v869_v59 = vmul.f32 %v864_v11, %v2458_v57  ;;  %v868_v63 = vmul.f32 %v864_v11, %v2468_v62 }
 0x288   : > { %v579_v24 = vrot.slane %v571_v13, %v2410_v40  ;;  %v586_v25 = vrot.slane %v572_v15, %v2410_v40  ;;  %v595_v26 = vrot.slane %v587_v16, %v2410_v40  ;;  %v602_v27 = vrot.slane %v588_v18, %v2410_v40 }
 0x289   : > { %874 = vrot.lane.b32.xlu0 %v866_v23, %s2235_s24  ;;  %v858_v9 = vmul.f32 %v2374_v17, %v2426_v12 }
 0x28a   : > { %v607_v29 = vcombine.low %v579_v24, %v586_v25  ;;  %v1910_v30 = vcombine.high %v579_v24, %v586_v25  ;;  %v623_v31 = vcombine.low %v595_v26, %v602_v27  ;;  %v1911_v33 = vcombine.high %v595_v26, %v602_v27 }
 0x28b   : > { %v835_v26 = vmul.f32 %v832_v1, %v2434_v28  ;;  %v859_v27 = vmul.f32 %v2374_v17, %v2434_v28 }
 0x28c   : > { %v614_v35 = vrot.slane %v607_v29, %v2400_v32  ;;  %v622_v36 = vrot.slane %v1910_v30, %v2400_v32  ;;  %v630_v37 = vrot.slane %v623_v31, %v2400_v32  ;;  %v638_v38 = vrot.slane %v1911_v33, %v2400_v32 }
 0x28d   : > { %876 = vrot.lane.b32.xlu0 %v867_v34, %s2235_s24 }
 0x28e   : > { %v639_v42 = vcombine.low %v614_v35, %v622_v36  ;;  %v640_v43 = vcombine.high %v614_v35, %v622_v36  ;;  %v655_v44 = vcombine.low %v630_v37, %v638_v38  ;;  %v656_v45 = vcombine.high %v630_v37, %v638_v38 }
 0x290   : > { %v647_v46 = vrot.slane %v639_v42, %v2410_v40  ;;  %v663_v47 = vrot.slane %v655_v44, %v2410_v40  ;;  %v654_v48 = vrot.slane %v640_v43, %v2410_v40  ;;  %v670_v49 = vrot.slane %v656_v45, %v2410_v40 }
 0x291   : > { %v861_v42 = vmul.f32 %v2374_v17, %v2458_v57  ;;  %v836_v44 = vmul.f32 %v832_v1, %v2468_v62 }
 0x292   : > { %v2446_v50 = vcombine.low %v647_v46, %v663_v47  ;;  %v2448_v51 = vcombine.high %v654_v48, %v670_v49  ;;  %v2454_v56 = vcombine.high %v647_v46, %v663_v47  ;;  %v2462_v60 = vcombine.low %v654_v48, %v670_v49 }
 0x293   : > { %v837_v46 = vmul.f32 %v832_v1, %v2458_v57 }
 0x294   : > { %v943_v54 = vmul.f32 %v864_v11, %v2446_v50  ;;  %v946_v55 = vmul.f32 %v864_v11, %v2448_v51  ;;  %v944_v58 = vmul.f32 %v864_v11, %v2454_v56  ;;  %v945_v61 = vmul.f32 %v864_v11, %v2462_v60 }
 0x295   : > { %v915_v2 = vmul.f32 %v832_v1, %v2446_v50  ;;  %v939_v5 = vmul.f32 %v2374_v17, %v2446_v50  ;;  %v940_v10 = vmul.f32 %v2374_v17, %v2454_v56  ;;  %v916_v16 = vmul.f32 %v832_v1, %v2454_v56 }
 0x296   : > { %951 = vrot.lane.b32.xlu1 %v943_v54, %s2235_s24  ;;  %957 = vrot.lane.b32.xlu0 %v946_v55, %s2235_s24  ;;  %v941_v25 = vmul.f32 %v2374_v17, %v2462_v60  ;;  %v917_v30 = vmul.f32 %v832_v1, %v2462_v60  ;;  %v918_v34 = vmul.f32 %v832_v1, %v2448_v51 }
 0x297   : > { %v942_v35 = vmul.f32 %v2374_v17, %v2448_v51  ;;  %v911_v48 = vmul.f32 %v2392_v22, %v2446_v50 }
 0x29a   : > { %953 = vrot.lane.b32.xlu1 %v944_v58, %s2235_s24  ;;  %880 = vrot.lane.b32.xlu0 %v869_v59, %s2235_s24 }
 0x29e   : > { %955 = vrot.lane.b32.xlu1 %v945_v61, %s2235_s24 }
 0x2a2   : > { %878 = vrot.lane.b32.xlu1 %v868_v63, %s2235_s24 }
 0x2a6   : > { %923 = vrot.lane.b32.xlu1 %v915_v2, %s2235_s24 }
 0x2aa   : > { %842 = vrot.lane.b32.xlu1 %v834_v3, %s2235_s24 }
 0x2fb   : > { %v875_v8 = vpop.permute.xlu0 %874 }
 0x2fc   : > { %v886_v13 = vadd.f32 %v875_v8, %v858_v9 }
 0x2ff   : > { %v877_v23 = vpop.permute.xlu0 %876 }
 0x300   : > { %v887_v33 = vadd.f32 %v877_v23, %v859_v27 }
 0x308   : > { %v952_v6 = vpop.permute.xlu1 %951  ;;  %v958_v31 = vpop.permute.xlu0 %957 }
 0x309   : > { %v963_v7 = vadd.f32 %v952_v6, %v939_v5  ;;  %v966_v38 = vadd.f32 %v958_v31, %v942_v35 }
 0x30b   : > { %971 = vrot.lane.b32.xlu0 %v963_v7, %s2231_s20 }
 0x30c   : > { %v954_v11 = vpop.permute.xlu1 %953  ;;  %v881_v41 = vpop.permute.xlu0 %880 }
 0x30d   : > { %v964_v15 = vadd.f32 %v954_v11, %v940_v10  ;;  %v889_v45 = vadd.f32 %v881_v41, %v861_v42  ;;  %v913_v11 = vmul.f32 %v2392_v22, %v2462_v60 }
 0x30f   : > { %v2109_v18 = vpack.i.bf16 %v964_v15, %v886_v13  ;;  %925 = vrot.lane.b32.xlu0 %v916_v16, %s2235_s24  ;;  %v914_v13 = vmul.f32 %v2392_v22, %v2448_v51 }
 0x310   : > { %v956_v24 = vpop.permute.xlu1 %955 }
 0x311   : > { %2110 = vrot.lane.b32.xlu1 %v2109_v18, %s2231_s20  ;;  %v965_v29 = vadd.f32 %v956_v24, %v941_v25 }
 0x313   : > { %844 = vrot.lane.b32.xlu0 %v835_v26, %s2235_s24  ;;  %v2114_v36 = vpack.i.bf16 %v965_v29, %v887_v33 }
 0x314   : > { %v879_v37 = vpop.permute.xlu1 %878 }
 0x315   : > { %927 = vrot.lane.b32.xlu1 %v917_v30, %s2235_s24  ;;  %v888_v43 = vadd.f32 %v879_v37, %v860_v39  ;;  %v829_v37 = vmul.f32 %v2392_v22, %v2458_v57 }
 0x317   : > { %929 = vrot.lane.b32.xlu0 %v918_v34, %s2235_s24  ;;  %v2119_v47 = vpack.i.bf16 %v889_v45, %v888_v43 }
 0x318   : > { %v924_v17 = vpop.permute.xlu1 %923 }
 0x319   : > { %2115 = vrot.lane.b32.xlu1 %v2114_v36, %s2231_s20  ;;  %v935_v49 = vsub.f32 %v911_v48, %v924_v17  ;;  %v828_v36 = vmul.f32 %v2392_v22, %v2468_v62 }
 0x31b   : > { %977 = vrot.lane.b32.xlu0 %v966_v38, %s2231_s20 }
 0x31c   : > { %v843_v54 = vpop.permute.xlu1 %842 }
 0x31d   : > { %846 = vrot.lane.b32.xlu1 %v836_v44, %s2235_s24 }
 0x31f   : > { %848 = vrot.lane.b32.xlu0 %v837_v46, %s2235_s24 }
 0x321   : > { %2120 = vrot.lane.b32.xlu1 %v2119_v47, %s2231_s20 }
 0x323   : > { %675 = vrot.lane.b32.xlu0 %v2367_v14, %s2236_s25  ;;  %v826_v14 = vmul.f32 %v2392_v22, %v2426_v12  ;;  %v827_v12 = vmul.f32 %v2392_v22, %v2434_v28 }
 0x325   : > { %677 = vrot.lane.b32.xlu1 %v2380_v19, %s2236_s25  ;;  %v912_v19 = vmul.f32 %v2392_v22, %v2454_v56  ;;  %v854_v50 = vsub.f32 %v826_v14, %v843_v54 }
 0x37d   : > { %v972_v52 = vpop.permute.xlu0 %971 }
 0x37e   : > { %v983_v53 = vsel %vm906_vm2, %v935_v49, %v972_v52 }
 0x37f   : > { %v991_v55 = vpack.c.bf16 %v983_v53, %v983_v53 }
 0x381   : > { %v926_v58 = vpop.permute.xlu0 %925  ;;  %v1000_v59 = vsel %vm995_vm3, %v991_v55, 0 }
 0x382   : > { %1983 = vmatpush3.bf16.xpose.msra.mxu0 %v1000_v59  ;;  %v936_v63 = vsub.f32 %v912_v19, %v926_v58 }
 0x383   : > { %v2111_v61 = vpop.permute.xlu1 %2110  ;;  %1988 = vmatprep.subr.bf16.mxu0 %v2226_v4 }
 0x384   : > { %v2113_v1 = vunpack.i.h.bf16 %v2111_v61  ;;  %v2112_v2 = vunpack.i.l.bf16 %v2111_v61 }
 0x385   : > { %v845_v3 = vpop.permute.xlu0 %844 }
 0x386   : > { %v907_v5 = vsel %vm906_vm2, %v854_v50, %v2112_v2  ;;  %v984_v6 = vsel %vm906_vm2, %v936_v63, %v2113_v1  ;;  %v855_v15 = vsub.f32 %v827_v12, %v845_v3 }
 0x387   : > { %v987_v7 = vpack.c.bf16 %v907_v5, %v907_v5  ;;  %v928_v8 = vpop.permute.xlu1 %927  ;;  %v992_v9 = vpack.c.bf16 %v984_v6, %v984_v6 }
 0x388   : > { %v937_v28 = vsub.f32 %v913_v11, %v928_v8 }
 0x389   : > { %1985 = vmatmul.mubr.msk.bf16.vlgmr.msra.gmra.mrb[4].mxu0 %vm995_vm3, %v987_v7  ;;  %v930_v56 = vpop.permute.xlu0 %929  ;;  %v1046_v10 = vsel %vm995_vm3, %v992_v9, 0 }
 0x38a   : > { %1989 = vmatpush3.bf16.xpose.msra.mxu0 %v1046_v10  ;;  %1990 = vmatprep.mubr.msk.bf16.mxu0 %vm2227_vm1, %v2226_v4  ;;  %v938_v18 = vsub.f32 %v914_v13, %v930_v56 }
 0x38b   : > { %v2116_v16 = vpop.permute.xlu1 %2115  ;;  %2000 = vmatprep.subr.bf16.mxu0 %v2226_v4 }
 0x38c   : > { %v2118_v23 = vunpack.i.h.bf16 %v2116_v16  ;;  %v2117_v24 = vunpack.i.l.bf16 %v2116_v16 }
 0x38d   : > { %v978_v25 = vpop.permute.xlu0 %977 }
 0x38e   : > { %v908_v26 = vsel %vm906_vm2, %v855_v15, %v2117_v24  ;;  %v986_v60 = vsel %vm906_vm2, %v938_v18, %v978_v25  ;;  %v985_v27 = vsel %vm906_vm2, %v937_v28, %v2118_v23 }
 0x38f   : > { %v988_v51 = vpack.c.bf16 %v908_v26, %v908_v26  ;;  %v994_v29 = vpack.c.bf16 %v986_v60, %v986_v60  ;;  %v847_v30 = vpop.permute.xlu1 %846  ;;  %v993_v31 = vpack.c.bf16 %v985_v27, %v985_v27 }
 0x390   : > { %v856_v39 = vsub.f32 %v828_v36, %v847_v30 }
 0x391   : > { %1991 = vmatmul.mubr.msk.bf16.vlgmr.msra.gmra.mrb[8].mxu0 %vm995_vm3, %v988_v51  ;;  %v849_v33 = vpop.permute.xlu0 %848  ;;  %v1092_v34 = vsel %vm995_vm3, %v993_v31, 0  ;;  %v1138_v35 = vsel %vm995_vm3, %v994_v29, 0 }
 0x392   : > { %1995 = vmatpush3.bf16.xpose.msra.mxu1 %v1092_v34  ;;  %2001 = vmatpush3.bf16.xpose.msra.mxu0 %v1138_v35  ;;  %v857_v41 = vsub.f32 %v829_v37, %v849_v33 }
 0x393   : > { %v2121_v38 = vpop.permute.xlu1 %2120  ;;  %2002 = vmatprep.mubr.msk.bf16.mxu0 %vm2227_vm1, %v2226_v4  ;;  %2006 = vmatprep.subr.bf16.mxu1 %v2226_v4 }
 0x394   : > { %v2123_v42 = vunpack.i.h.bf16 %v2121_v38  ;;  %v2122_v43 = vunpack.i.l.bf16 %v2121_v38  ;;  %2012 = vmatprep.subr.bf16.mxu0 %v2226_v4 }
 0x395   : > { %v676_v5 = vpop.permute.xlu0 %675 }
 0x396   : > { %v909_v44 = vsel %vm906_vm2, %v856_v39, %v2122_v43  ;;  %v910_v62 = vsel %vm906_vm2, %v857_v41, %v2123_v42 }
 0x397   : > { %v989_v45 = vpack.c.bf16 %v909_v44, %v909_v44  ;;  %v990_v22 = vpack.c.bf16 %v910_v62, %v910_v62  ;;  %v678_v9 = vpop.permute.xlu1 %677 }
 0x399   : > { %1997 = vmatmul.mubr.msk.bf16.vlgmr.msra.gmra.mrb[0].mxu1 %vm995_vm3, %v989_v45  ;;  %2003 = vmatmul.mubr.msk.bf16.vlgmr.msra.gmra.mrb[12].mxu0 %vm995_vm3, %v990_v22 }
 0x39a   : > { %2008 = vmatprep.mubr.msk.bf16.mxu1 %vm2227_vm1, %v2226_v4  ;;  %2014 = vmatprep.mubr.msk.bf16.mxu0 %vm2227_vm1, %v2226_v4 }
 0x45c   : > { %v1036_v57 = vpop.f32.mrb[4].mxu0 }
 0x45d   : > { %v1986_v46 = vpop.f32.mrb[5].mxu0  ;;  %v1180_v47 = vsel %vm995_vm3, %v1036_v57, -inf }
 0x45e   : > { %1181 = vmax.xlane.f32.xlu0 %v1180_v47  ;;  %v1039_v17 = vpop.f32.mrb[6].mxu0 }
 0x45f   : > { %v1987_v48 = vpop.f32.mrb[7].mxu0 }
 0x464   : > { %v1082_v49 = vpop.f32.mrb[8].mxu0 }
 0x465   : > { %v1992_v52 = vpop.f32.mrb[9].mxu0  ;;  %v1183_v53 = vsel %vm995_vm3, %v1082_v49, -inf }
 0x466   : > { %1184 = vmax.xlane.f32.xlu1 %v1183_v53  ;;  %v1085_v54 = vpop.f32.mrb[10].mxu0 }
 0x467   : > { %v1993_v55 = vpop.f32.mrb[11].mxu0 }
 0x46c   : > { %v2559_v58 = vpop.f32.mrb[0].mxu1  ;;  %v2561_v59 = vpop.f32.mrb[12].mxu0 }
 0x46d   : > { %v1998_v14 = vpop.f32.mrb[1].mxu1  ;;  %v2004_v19 = vpop.f32.mrb[13].mxu0  ;;  %v1186_v2 = vsel %vm995_vm3, %v2559_v58, -inf  ;;  %v1189_v3 = vsel %vm995_vm3, %v2561_v59, -inf }
 0x46e   : > { %v1131_v61 = vpop.f32.mrb[2].mxu1  ;;  %v1177_v50 = vpop.f32.mrb[14].mxu0 }
 0x46f   : > { %v1999_v63 = vpop.f32.mrb[3].mxu1  ;;  %v2005_v1 = vpop.f32.mrb[15].mxu0 }
 0x474   : > { %679 = vrot.lane.b32.xlu0 %v2383_v20, %s2236_s25 }
 0x477   : > { %681 = vrot.lane.b32.xlu1 %v2386_v21, %s2236_s25 }
 0x493   : > { %1187 = vmax.xlane.f32.xlu0 %v1186_v2 }
 0x49b   : > { %1190 = vmax.xlane.f32.xlu1 %v1189_v3 }
 0x4eb   : > { %v1182_v6 = vpop.xlane.xlu0 %1181 }
 0x4ec   : > { %v1192_v7 = vsub.f32 %v1036_v57, %v1182_v6 }
 0x4ee   : > { %v1196_v8 = vmul.f32 1.442695, %v1192_v7 }
 0x4ef   : > { %v680_v12 = vpop.permute.xlu0 %679 }
 0x4f0   : > { %2142 = vpow2.f32 %v1196_v8  ;;  %v687_v10 = vcombine.low %v676_v5, %v680_v12  ;;  %v688_v11 = vcombine.high %v676_v5, %v680_v12 }
 0x4f2   : > { %v695_v18 = vrot.slane %v687_v10, %v2400_v32  ;;  %v702_v23 = vrot.slane %v688_v11, %v2400_v32 }
 0x4f3   : > { %v1185_v56 = vpop.xlane.xlu1 %1184 }
 0x4f4   : > { %v1193_v20 = vsub.f32 %v1082_v49, %v1185_v56 }
 0x4f6   : > { %v1198_v21 = vmul.f32 1.442695, %v1193_v20 }
 0x4f7   : > { %v682_v13 = vpop.permute.xlu1 %681 }
 0x4f8   : > { %2144 = vpow2.f32 %v1198_v21  ;;  %v703_v15 = vcombine.low %v678_v9, %v682_v13  ;;  %v704_v16 = vcombine.high %v678_v9, %v682_v13 }
 0x4fa   : > { %v2143_v28 = vpop.eup %2142  ;;  %v711_v24 = vrot.slane %v703_v15, %v2400_v32  ;;  %v718_v25 = vrot.slane %v704_v16, %v2400_v32 }
 0x4fb   : > { %v1204_v26 = vsel %vm995_vm3, %v2143_v28, 0.0  ;;  %v1216_v2 = vpack.c.bf16 %v2143_v28, %v2143_v28 }
 0x4fc   : > { %v719_v60 = vcombine.low %v695_v18, %v711_v24  ;;  %v720_v27 = vcombine.high %v695_v18, %v711_v24  ;;  %v735_v51 = vcombine.low %v702_v23, %v718_v25  ;;  %v736_v29 = vcombine.high %v702_v23, %v718_v25  ;;  %1205 = vadd.xlane.f32.xlu0 %v1204_v26 }
 0x4fe   : > { %v727_v30 = vrot.slane %v719_v60, %v2410_v40  ;;  %v734_v31 = vrot.slane %v720_v27, %v2410_v40  ;;  %v743_v33 = vrot.slane %v735_v51, %v2410_v40  ;;  %v750_v34 = vrot.slane %v736_v29, %v2410_v40 }
 0x500   : > { %v755_v35 = vcombine.low %v727_v30, %v734_v31  ;;  %v1912_v36 = vcombine.high %v727_v30, %v734_v31  ;;  %v771_v37 = vcombine.low %v743_v33, %v750_v34  ;;  %v1913_v38 = vcombine.high %v743_v33, %v750_v34 }
 0x502   : > { %v2145_v39 = vpop.eup %2144  ;;  %v762_v41 = vrot.slane %v755_v35, %v2400_v32  ;;  %v770_v42 = vrot.slane %v1912_v36, %v2400_v32  ;;  %v778_v43 = vrot.slane %v771_v37, %v2400_v32  ;;  %v786_v44 = vrot.slane %v1913_v38, %v2400_v32 }
 0x503   : > { %v1207_v62 = vsel %vm995_vm3, %v2145_v39, 0.0  ;;  %v1217_v3 = vpack.c.bf16 %v2145_v39, %v2145_v39 }
 0x504   : > { %1208 = vadd.xlane.f32.xlu0 %v1207_v62  ;;  %v787_v45 = vcombine.low %v762_v41, %v770_v42  ;;  %v803_v22 = vcombine.low %v778_v43, %v786_v44  ;;  %v788_v57 = vcombine.high %v762_v41, %v770_v42  ;;  %v804_v46 = vcombine.high %v778_v43, %v786_v44 }
 0x506   : > { %v795_v47 = vrot.slane %v787_v45, %v2410_v40  ;;  %v811_v17 = vrot.slane %v803_v22, %v2410_v40  ;;  %v802_v48 = vrot.slane %v788_v57, %v2410_v40  ;;  %v818_v49 = vrot.slane %v804_v46, %v2410_v40 }
 0x508   : > { %v819_v52 = vcombine.low %v795_v47, %v811_v17  ;;  %v820_v53 = vcombine.high %v795_v47, %v811_v17  ;;  %v821_v54 = vcombine.low %v802_v48, %v818_v49  ;;  %v822_v55 = vcombine.high %v802_v48, %v818_v49 }
 0x50a   : > { %v1220_v14 = vpack.c.bf16 %v819_v52, %v819_v52  ;;  %v1221_v19 = vpack.c.bf16 %v820_v53, %v820_v53  ;;  %v1222_v63 = vpack.c.bf16 %v821_v54, %v821_v54  ;;  %v1223_v1 = vpack.c.bf16 %v822_v55, %v822_v55 }
 0x50c   : > { %v1229_v61 = vsel %vm1227_vm4, %v1220_v14, 0  ;;  %v1275_v50 = vsel %vm1227_vm4, %v1221_v19, 0  ;;  %v1321_v5 = vsel %vm1227_vm4, %v1222_v63, 0  ;;  %v1367_v6 = vsel %vm1227_vm4, %v1223_v1, 0 }
 0x50d   : > { %2007 = vmatpush3.bf16.msra.mxu1 %v1229_v61  ;;  %2013 = vmatpush3.bf16.msra.mxu0 %v1275_v50  ;;  %v2126_v61 = vld [vmem:[%s2739_s5] sm:$0xff]  }
 0x50e   : > { %2018 = vmatprep.subr.bf16.mxu1 %v2226_v4  ;;  %2024 = vmatprep.subr.bf16.mxu0 %v2226_v4 }
 0x510   : > { %2009 = vmatmul.mubr.msk.bf16.vlgmr.msra.gmra.mrb[4].mxu1 %vm995_vm3, %v1216_v2  ;;  %2015 = vmatmul.mubr.msk.bf16.vlgmr.msra.gmra.mrb[16].mxu0 %vm995_vm3, %v1217_v3 }
 0x511   : > { %2019 = vmatpush3.bf16.msra.mxu1 %v1321_v5  ;;  %2025 = vmatpush3.bf16.msra.mxu0 %v1367_v6 }
 0x512   : > { %2020 = vmatprep.mubr.msk.bf16.mxu1 %vm2227_vm1, %v2226_v4  ;;  %2026 = vmatprep.mubr.msk.bf16.mxu0 %vm2227_vm1, %v2226_v4 }
 0x513   : > { %2030 = vmatprep.subr.bf16.mxu1 %v2226_v4 }
 0x520   : > { %v1188_v7 = vpop.xlane.xlu0 %1187 }
 0x521   : > { %v1194_v8 = vsub.f32 %v2559_v58, %v1188_v7 }
 0x523   : > { %v1200_v9 = vmul.f32 1.442695, %v1194_v8 }
 0x525   : > { %2146 = vpow2.f32 %v1200_v9 }
 0x528   : > { %v1191_v12 = vpop.xlane.xlu1 %1190 }
 0x529   : > { %v1195_v56 = vsub.f32 %v2561_v59, %v1191_v12 }
 0x52b   : > { %v1202_v20 = vmul.f32 1.442695, %v1195_v56 }
 0x52d   : > { %2148 = vpow2.f32 %v1202_v20  ;;  %v2127_v20 = vld [vmem:[%s2739_s5 + $0x8] sm:$0xff]  }
 0x52f   : > { %v2147_v10 = vpop.eup %2146 }
 0x530   : > { %v1210_v11 = vsel %vm995_vm3, %v2147_v10, 0.0  ;;  %v1218_v21 = vpack.c.bf16 %v2147_v10, %v2147_v10 }
 0x531   : > { %1211 = vadd.xlane.f32.xlu1 %v1210_v11 }
 0x532   : > { %2021 = vmatmul.mubr.msk.bf16.vlgmr.msra.gmra.mrb[8].mxu1 %vm995_vm3, %v1218_v21 }
 0x533   : > { %2034 = vmatprep.mubr.msk.bf16.mxu1 %vm2227_vm1, %v2226_v4  ;;  %2031 = vmatpush3.bf16.msra.mxu1 %v2126_v61 }
 0x534   : > { %2032 = vmatprep.subr.bf16.mxu1 %v2226_v4 }
 0x537   : > { %v2149_v13 = vpop.eup %2148  ;;  %2033 = vmatpush3.bf16.msra.mxu1 %v2127_v20 }
 0x538   : > { %v1213_v58 = vsel %vm995_vm3, %v2149_v13, 0.0  ;;  %v1219_v15 = vpack.c.bf16 %v2149_v13, %v2149_v13  ;;  %2038 = vmatprep.subr.bf16.mxu1 %v2226_v4 }
 0x539   : > { %1214 = vadd.xlane.f32.xlu0 %v1213_v58 }
 0x53a   : > { %2027 = vmatmul.mubr.msk.bf16.vlgmr.msra.gmra.mrb[20].mxu0 %vm995_vm3, %v1219_v15 }
 0x589   : > { %v1206_v60 = vpop.xlane.xlu0 %1205 }
 0x58a   : > { %2150 = vrcp.f32 %v1206_v60 }
 0x591   : > { %v1209_v51 = vpop.xlane.xlu0 %1208 }
 0x594   : > { %v2151_v30 = vpop.eup %2150 }
 0x5be   : > { %v1212_v27 = vpop.xlane.xlu1 %1211 }
 0x5bf   : > { %2152 = vrcp.f32 %v1212_v27 }
 0x5c0   : > { %2154 = vrcp.f32 %v1209_v51 }
 0x5c6   : > { %v1215_v29 = vpop.xlane.xlu0 %1214 }
 0x5c7   : > { %2156 = vrcp.f32 %v1215_v29 }
 0x5c9   : > { %v2153_v31 = vpop.eup %2152 }
 0x5ca   : > { %v2155_v42 = vpop.eup %2154 }
 0x5d1   : > { %v2157_v43 = vpop.eup %2156 }
 0x5e3   : > { %v1265_v59 = vpop.f32.mrb[4].mxu1  ;;  %v1311_v16 = vpop.f32.mrb[16].mxu0 }
 0x5e4   : > { %v2010_v28 = vpop.f32.mrb[5].mxu1  ;;  %v2016_v18 = vpop.f32.mrb[17].mxu0  ;;  %v1410_v34 = vmul.f32 %v2151_v30, %v1265_v59  ;;  %v1412_v62 = vmul.f32 %v2155_v42, %v1311_v16 }
 0x5e5   : > { %v1268_v23 = vpop.f32.mrb[6].mxu1  ;;  %v1314_v24 = vpop.f32.mrb[18].mxu0 }
 0x5e6   : > { %v2011_v25 = vpop.f32.mrb[7].mxu1  ;;  %v2017_v26 = vpop.f32.mrb[19].mxu0 }
 0x605   : > { %v1357_v33 = vpop.f32.mrb[8].mxu1 }
 0x606   : > { %v1414_v35 = vmul.f32 %v2153_v31, %v1357_v33  ;;  %v2022_v36 = vpop.f32.mrb[9].mxu1 }
 0x607   : > { %v1360_v37 = vpop.f32.mrb[10].mxu1 }
 0x608   : > { %v1417_v38 = vcombine.low %v1410_v34, %v1414_v35  ;;  %v1418_v39 = vcombine.high %v1410_v34, %v1414_v35  ;;  %v2023_v41 = vpop.f32.mrb[11].mxu1  ;;  %v2128_v37 = vld [vmem:[%s2740_s6] ss:$8 sps:$4 sm:$0xff]  }
 0x609   : > { %v2131_v41 = vld [vmem:[%s2740_s6 + $0x10] ss:$8 sps:$4 sm:$0xff]  }
 0x60a   : > { %v1425_v48 = vrot.slane %v1417_v38, %v2400_v32  ;;  %v1432_v49 = vrot.slane %v1418_v39, %v2400_v32  ;;  %v2130_v38 = vld [vmem:[%s2740_s6 + $0x4] ss:$8 sps:$4 sm:$0xff]   ;;  %v2240_v39 = vmov 0  }
 0x60b   : > { %1675 = vmatprep.subr.bf16.mxu0 %v2130_v38  ;;  %1707 = vmatprep.mubr.bf16.mxu0 %v2240_v39 }
 0x60c   : > { %1676 = vmatpush1.bf16.msra.mxu0 %v2128_v37 }
 0x60d   : > { %v1403_v44 = vpop.f32.mrb[20].mxu0 }
 0x60e   : > { %v1416_v45 = vmul.f32 %v2157_v43, %v1403_v44  ;;  %v2028_v22 = vpop.f32.mrb[21].mxu0 }
 0x60f   : > { %v1406_v57 = vpop.f32.mrb[22].mxu0 }
 0x610   : > { %v1433_v46 = vcombine.low %v1412_v62, %v1416_v45  ;;  %v1434_v47 = vcombine.high %v1412_v62, %v1416_v45  ;;  %v2029_v17 = vpop.f32.mrb[23].mxu0  ;;  %v1928_v45 = vld [vmem:[%s2737_s3] ss:$0 sm:$0xff] }
 0x611   : > { %v2135_v17 = vld [vmem:[%s2741_s7 + $0x8] sm:$0xff]  }
 0x612   : > { %v1441_v52 = vrot.slane %v1433_v46, %v2400_v32  ;;  %v1448_v53 = vrot.slane %v1434_v47, %v2400_v32  ;;  %v2134_v47 = vld [vmem:[%s2741_s7] sm:$0xff]  }
 0x614   : > { %v1449_v54 = vcombine.low %v1425_v48, %v1441_v52  ;;  %v1450_v55 = vcombine.high %v1425_v48, %v1441_v52  ;;  %v1465_v14 = vcombine.low %v1432_v49, %v1448_v53  ;;  %v1466_v19 = vcombine.high %v1432_v49, %v1448_v53  ;;  %v2136_v48 = vld [vmem:[%s2741_s7 + $0x10] sm:$0xff]   ;;  %v2137_v49 = vld [vmem:[%s2741_s7 + $0x18] sm:$0xff]   ;;  %v2138_v52 = vld [vmem:[%s2741_s7 + $0x20] sm:$0xff]  }
 0x615   : > { %v2139_v53 = vld [vmem:[%s2741_s7 + $0x28] sm:$0xff]  }
 0x616   : > { %v1457_v50 = vrot.slane %v1449_v54, %v2410_v40  ;;  %v1464_v63 = vrot.slane %v1450_v55, %v2410_v40  ;;  %v1473_v1 = vrot.slane %v1465_v14, %v2410_v40  ;;  %v1480_v2 = vrot.slane %v1466_v19, %v2410_v40 }
 0x618   : > { %v1485_v3 = vcombine.low %v1457_v50, %v1464_v63  ;;  %v1923_v5 = vcombine.high %v1457_v50, %v1464_v63  ;;  %v1501_v6 = vcombine.low %v1473_v1, %v1480_v2  ;;  %v1924_v7 = vcombine.high %v1473_v1, %v1480_v2 }
 0x61a   : > { %v1492_v8 = vrot.slane %v1485_v3, %v2400_v32  ;;  %v1500_v9 = vrot.slane %v1923_v5, %v2400_v32  ;;  %v1508_v12 = vrot.slane %v1501_v6, %v2400_v32  ;;  %v1516_v56 = vrot.slane %v1924_v7, %v2400_v32 }
 0x61c   : > { %v1518_v10 = vcombine.high %v1492_v8, %v1500_v9  ;;  %v1534_v11 = vcombine.high %v1508_v12, %v1516_v56  ;;  %v1517_v21 = vcombine.low %v1492_v8, %v1500_v9  ;;  %v1533_v13 = vcombine.low %v1508_v12, %v1516_v56 }
 0x61e   : > { %v1532_v58 = vrot.slane %v1518_v10, %v2410_v40  ;;  %v1548_v15 = vrot.slane %v1534_v11, %v2410_v40  ;;  %v1525_v59 = vrot.slane %v1517_v21, %v2410_v40  ;;  %v1541_v16 = vrot.slane %v1533_v13, %v2410_v40 }
 0x620   : > { %v1551_v32 = vcombine.low %v1532_v58, %v1548_v15  ;;  %v1550_v28 = vcombine.high %v1525_v59, %v1541_v16  ;;  %v1552_v18 = vcombine.high %v1532_v58, %v1548_v15  ;;  %v1549_v23 = vcombine.low %v1525_v59, %v1541_v16 }
 0x622   : > { %1558 = vrot.lane.b32.xlu0 %v1551_v32, %s2237_s17  ;;  %1554 = vrot.lane.b32.xlu1 %v1550_v28, %s2238_s18  ;;  %s294_s17 = sand.u32 1, %s2216_s28  }
 0x623   : > { %s1902_s18 = sshll.u32 %s294_s17, 3 }
 0x624   : > { %s296_s20 = scalar_lea.vmem [#allocation2], %s1902_s18 }
 0x625   : > { %s1839_s21 = sshll.u32 %s296_s20, 4  ;;  %s2693_s21 = int_to_ptr.vmem [resolvable:$true] %s1839_s21 }
 0x626   : > { %1562 = vrot.lane.b32.xlu1 %v1552_v18, %s2239_s19  ;;  %s1942_s19 = sshll.u32 %s2309_s9, 7  ;;  %s1826_s9 = scalar_lea.sflag [#allocation3], %s294_s17 }
 0x627   : > { %s2691_s24 = scalar_lea.hbm %s2742_s8, %s1942_s19  ;;  %s2162_s25 = scalar_lea.vmem %s2693_s21, 128 }
 0x628   : > { %p2163_p11 = scmp.ne.s32.totalorder %s2693_s21, %s2162_s25  ;;  %p2169_p0 = scmp.lt.s32.totalorder %s2693_s21, %s2167_s10 }
 0x629   : > { %p2170_p1 = scmp.lt.s32.totalorder %s2168_s12, %s2162_s25 }
 0x62a   : > { %p2164_p12 = pnand %p2163_p11, %p2326_p5 }
 0x62b   : > { %p2171_p2 = por %p2170_p1, %p2169_p0 }
 0x62c   : > { %p2165_p13 = pneg %p2164_p12 }
 0x62e   : > { %p2172_p3 = pnand %p2171_p2, %p2165_p13 }
 0x694   : > { %v1555_v24 = vpop.permute.xlu1 %1554  ;;  %v1559_v25 = vpop.permute.xlu0 %1558 }
 0x695   : > { %v1565_v26 = vsel %vm995_vm3, %v1549_v23, %v1555_v24 }
 0x696   : > { %v1567_v27 = vsel %vm1566_vm5, %v1565_v26, %v1559_v25 }
 0x698   : > { %v1563_v60 = vpop.permute.xlu1 %1562 }
 0x699   : > { %v1569_v51 = vsel %vm1568_vm6, %v1567_v27, %v1563_v60 }
 0x69a   : > { %v1570_v40 = vpack.c.bf16 %v1569_v51, %v1569_v51 }
 0x69c   : > { %2035 = vmatmul.mubr.msk.bf16.vlgmr.msra.gmra.mrb[12].mxu1 %vm304_vm0, %v1570_v40 }
 0x69d   : > { %2050 = vmatprep.mubr.msk.bf16.mxu1 %vm2227_vm1, %v2226_v4  ;;  %2039 = vmatpush3.bf16.msra.mxu1 %v2134_v47 }
 0x69e   : > { %2040 = vmatprep.subr.bf16.mxu1 %v2226_v4 }
 0x6a1   : > { %2041 = vmatpush3.bf16.msra.mxu1 %v2135_v17 }
 0x6a2   : > { %2042 = vmatprep.subr.bf16.mxu1 %v2226_v4 }
 0x6a5   : > { %2043 = vmatpush3.bf16.msra.mxu1 %v2136_v48 }
 0x6a6   : > { %2044 = vmatprep.subr.bf16.mxu1 %v2226_v4 }
 0x6a9   : > { %2045 = vmatpush3.bf16.msra.mxu1 %v2137_v49 }
 0x6aa   : > { %2046 = vmatprep.subr.bf16.mxu1 %v2226_v4 }
 0x6ad   : > { %2047 = vmatpush3.bf16.msra.mxu1 %v2138_v52 }
 0x6ae   : > { %2048 = vmatprep.subr.bf16.mxu1 %v2226_v4 }
 0x6b1   : > { %2049 = vmatpush3.bf16.msra.mxu1 %v2139_v53 }
 0x76f   : > { %v1624_v29 = vpop.f32.mrb[12].mxu1 }
 0x770   : > { %v2639_v30 = vadd.f32 %v1624_v29, %v2341_v0  ;;  %v2036_v31 = vpop.f32.mrb[13].mxu1  ;;  %v2133_v0 = vld [vmem:[%s2740_s6 + $0x14] ss:$8 sps:$4 sm:$0xff]  }
 0x771   : > { %v1627_v33 = vpop.f32.mrb[14].mxu1  ;;  %1677 = vmatprep.subr.bf16.mxu0 %v2133_v0 }
 0x772   : > { %v2037_v34 = vpop.f32.mrb[15].mxu1  ;;  %v1631_v35 = vmul.f32 %v2639_v30, %v2639_v30  ;;  %1678 = vmatpush1.bf16.msra.mxu0 %v2131_v41 }
 0x774   : > { %v1632_v36 = vsel %vm304_vm0, %v1631_v35, 0.0 }
 0x775   : > { %1633 = vadd.xlane.f32.xlu1 %v1632_v36 }
 0x802   : > { %v1634_v42 = vpop.xlane.xlu1 %1633 }
 0x803   : > { %v1635_v43 = vmul.f32 0.03125, %v1634_v42 }
 0x805   : > { %v1636_v44 = vadd.f32 1e-05, %v1635_v43 }
 0x807   : > { %2158 = vrsqrt.f32 %v1636_v44 }
 0x811   : > { %v2159_v62 = vpop.eup %2158 }
 0x812   : > { %v1638_v22 = vmul.f32 %v2159_v62, %v2639_v30 }
 0x814   : > { %v1646_v57 = vmul.f32 %v1928_v45, %v1638_v22 }
 0x816   : > { %v1647_v46 = vpack.c.bf16 %v1646_v57, %v1646_v57 }
 0x818   : > { %1933 = vmatmul.mubr.msk.bf16.vlgmr.msra.gmra.mrb[24].mxu0 %vm304_vm0, %v1647_v46 }
 0x8eb   : > { %v1709_v54 = vpop.f32.mrb[24].mxu0 }
 0x8ec   : > { %1723 = vrot.lane.b32.xlu0 %v1709_v54, %s2241_s13  ;;  %v1711_v55 = vpop.f32.mrb[25].mxu0  ;;  %v1716_v61 = vmul.f32 0.5, %v1709_v54 }
 0x8ed   : > { %v1713_v14 = vpop.f32.mrb[26].mxu0 }
 0x8ee   : > { %v1714_v19 = vpop.f32.mrb[27].mxu0  ;;  %2160 = vtanh.f32 %v1716_v61 }
 0x8f0   : > { %1725 = vrot.lane.b32.xlu0 %v1711_v55, %s2241_s13 }
 0x8f8   : > { %v2161_v50 = vpop.eup %2160 }
 0x8f9   : > { %v1718_v63 = vadd.f32 1.0, %v2161_v50 }
 0x8fb   : > { %v1719_v1 = vmul.f32 0.5, %v1718_v63 }
 0x8fd   : > { %v1720_v2 = vmul.f32 %v1719_v1, %v1709_v54 }
 0x95e   : > { %v1724_v4 = vpop.permute.xlu0 %1723 }
 0x962   : > { %v1726_v3 = vpop.permute.xlu0 %1725 }
 0x963   : > { %v1727_v5 = vsel %vm304_vm0, %v1724_v4, %v1726_v3 }
 0x964   : > { %v1729_v6 = vmul.f32 %v1727_v5, %v1720_v2 }
 0x966   : > { %v1730_v7 = vpack.c.bf16 %v1729_v6, %v1729_v6 }
 0x968   : > { %2051 = vmatmul.mubr.msk.bf16.vlgmr.msra.gmra.mrb[16].mxu1 %vm1779_vm7, %v1730_v7 }
 0xa3b   : > { %v1817_v8 = vpop.f32.mrb[16].mxu1 }
 0xa3c   : > { %v1823_v9 = vadd.f32 %v1817_v8, %v2639_v30  ;;  %v2052_v12 = vpop.f32.mrb[17].mxu1 }
 0xa3d   : > { %v1820_v56 = vpop.f32.mrb[18].mxu1 }
 0xa3e   : > { %v2053_v20 = vpop.f32.mrb[19].mxu1  ;;  %1824 = vst.msk [vmem:[%s296_s20] sm:$0xff] %vm304_vm0, %v1823_v9 }
 0xa3f   : > { %2175 = shalt.err (!%p2172_p3)
}
 0xa40   : > { %s2176_s13 = scalar_lea.hbm %s2691_s24, 128  ;;  %s2180_s19 = scalar_lea.hbm %s2742_s8, 256 }
 0xa41   : > { %p2177_p4 = scmp.ne.s32.totalorder %s2691_s24, %s2176_s13  ;;  %p2181_p9 = scmp.lt.u32.totalorder %s2691_s24, %s2742_s8 }
 0xa42   : > { %p2182_p10 = scmp.lt.u32.totalorder %s2180_s19, %s2176_s13  ;;  %p2184_p12 = scmp.lt.u32.totalorder %s2176_s13, %s2691_s24 }
 0xa43   : > { %p2178_p7 = pnand %p2177_p4, %p2326_p5 }
 0xa44   : > { %p2183_p11 = por %p2182_p10, %p2181_p9 }
 0xa45   : > { %p2179_p8 = pneg %p2178_p7 }
 0xa46   : > { %p2185_p13 = por %p2184_p12, %p2183_p11 }
 0xa48   : > { %p2186_p0 = pnand %p2185_p13, %p2179_p8 }
 0xa4a   : > { %2189 = shalt.err (!%p2186_p0)
}
 0xa4b   : > { %2054 = dma.vmem_to_hbm [thread:$0]  (%p2326_p5), %s2693_s21, 128, %s2691_s24, %s1826_s9  }
 0xa4c PF: > { %p2060_p1 = scmp.ge.s32.totalorder %s2224_s30, 2  ;;  %s1851_s23 = sand.u32 1, %s2212_s27  }
 0xa4d   : > { %s1852_s25 = scalar_lea.sflag [#allocation3], %s1851_s23 }
 0xa4e   : > { %p2057_p2 = pnand %p2060_p1, %p2330_p6 }
 0xa50   : > { %2207 = dma.done.wait (!%p2057_p2), %s1852_s25, 128  }
 0xa51   : > { %2209 = vsyncadd (!%p2057_p2), %s1852_s25, 4294967168  ;;  %p18_p3 = scmp.ge.s32.totalorder %s2313_s11, 4   ;;  %s2745_s27 = smov %s2216_s28 }
 0xa52   : > { %s2746_s28 = smov %s2220_s29  ;;  %s2747_s29 = smov %s2324_s14 }
 0xa53   : > { %s2748_s30 = smov %s2313_s11  ;;  %20 = sbr.rel (!%p18_p3) target bundleno = 3 (0x3), region = 88 }
 0xa5a   :  { %1857 = vsyncpa [#allocation3], 1 }
 0xa5b   :  { %1859 = vsyncpa [#allocation3 + $0x1], 1 }

</bundles_post_ra>
